<compile_context>
chip_gen: v5e
topology: v5e:2x2
jax: 0.10.0
libtpu: 0.0.40
codegen_flags: <defaults>
</compile_context>

<pallas_src>
import jax
import jax.numpy as jnp
from jax.experimental import pallas as pl
from jax.experimental.pallas import tpu as pltpu


D_IN, D_H1, D_H2 = 180, 128, 64  # 180 -> 128 -> 64 -> 128 -> 180


def tsnet_kernel(x_ref,
                 w1_ref, b1_ref,
                 w2_ref, b2_ref,
                 w3_ref, b3_ref,
                 w4_ref, b4_ref,
                 o_ref):
    # One (TB, 180) batch tile per grid step; weights stay resident in VMEM.
    x = x_ref[...]  # f32

    # fc1 + ReLU   (bf16 MXU inputs, f32 accumulation, f32 VPU epilogue)
    h1 = jnp.dot(x.astype(jnp.bfloat16), w1_ref[...],
                 preferred_element_type=jnp.float32) + b1_ref[...]
    h1 = jnp.maximum(h1, 0.0)

    # fc2 (no activation)
    h2 = jnp.dot(h1.astype(jnp.bfloat16), w2_ref[...],
                 preferred_element_type=jnp.float32) + b2_ref[...]

    # fc3 + ReLU
    h3 = jnp.dot(h2.astype(jnp.bfloat16), w3_ref[...],
                 preferred_element_type=jnp.float32) + b3_ref[...]
    h3 = jnp.maximum(h3, 0.0)

    # fc4
    y = jnp.dot(h3.astype(jnp.bfloat16), w4_ref[...],
                preferred_element_type=jnp.float32) + b4_ref[...]
    o_ref[...] = y.astype(o_ref.dtype)


def _round_up(n, m):
    return ((n + m - 1) // m) * m


def tsnet_forward(x, params, *, block_b=256):
    """x: (B, 180) float32; params: dict of (w1,b1,...,w4,b4).

    Weights are (in, out) bf16; biases are (1, out) f32.
    """
    B, F = x.shape
    assert F == D_IN, F

    # Batch tile: multiple of 8 sublanes, default 256 rows to fill the MXU.
    TB = min(block_b, _round_up(B, 8))
    B_pad = _round_up(B, TB)
    if B_pad != B:
        x = jnp.pad(x, ((0, B_pad - B), (0, 0)))
    grid = (B_pad // TB,)

    w1, b1 = params["w1"], params["b1"]
    w2, b2 = params["w2"], params["b2"]
    w3, b3 = params["w3"], params["b3"]
    w4, b4 = params["w4"], params["b4"]

    # x/out: tiled along the batch; weights/biases: constant block -> loaded
    # once and kept resident in VMEM for the whole grid.
    io_spec = pl.BlockSpec((TB, D_IN), lambda i: (i, 0))

    def resident(arr):
        return pl.BlockSpec(arr.shape, lambda i: (0, 0))

    flops = 2 * B_pad * (D_IN * D_H1 + D_H1 * D_H2 + D_H2 * D_H1 + D_H1 * D_IN)
    weight_bytes = sum(int(v.size) * v.dtype.itemsize for v in params.values())
    bytes_accessed = weight_bytes + int(x.size) * 4 + B_pad * D_IN * 4

    out = pl.pallas_call(
        tsnet_kernel,
        out_shape=jax.ShapeDtypeStruct((B_pad, D_IN), jnp.float32),
        grid=grid,
        in_specs=[io_spec,
                  resident(w1), resident(b1),
                  resident(w2), resident(b2),
                  resident(w3), resident(b3),
                  resident(w4), resident(b4)],
        out_specs=io_spec,
        compiler_params=pltpu.CompilerParams(
            dimension_semantics=("parallel",)),  # use both v7x TensorCores
        cost_estimate=pl.CostEstimate(
            flops=flops, transcendentals=0, bytes_accessed=bytes_accessed),
    )(x, w1, b1, w2, b2, w3, b3, w4, b4)

    return out[:B] if B_pad != B else out


def init_params(key):
    """Deterministic init matching torch.nn.Linear shapes.
    torch stores W as (out, in); we store the transpose (in, out) so the
    kernel computes x @ W directly. Weights live in bf16 (MXU input dtype),
    biases in f32. Init is U(-1/sqrt(in), 1/sqrt(in)) like torch's default."""
    dims = [(D_IN, D_H1), (D_H1, D_H2), (D_H2, D_H1), (D_H1, D_IN)]
    params = {}
    for i, (fan_in, fan_out) in enumerate(dims, start=1):
        key, kw, kb = jax.random.split(key, 3)
        bound = 1.0 / jnp.sqrt(float(fan_in))
        w = jax.random.uniform(kw, (fan_in, fan_out), jnp.float32,
                               minval=-bound, maxval=bound)
        params[f"w{i}"] = w.astype(jnp.bfloat16)
        # keep bias 2-D (1, out) f32 so it broadcasts cleanly in VMEM
        params[f"b{i}"] = jax.random.uniform(kb, (1, fan_out), jnp.float32,
                                             minval=-bound, maxval=bound)
    return params


def tsnet_reference(x, params):
    """Plain-JAX f32 reference of the same forward pass (weights upcast)."""
    w1 = params["w1"].astype(jnp.float32)
    w2 = params["w2"].astype(jnp.float32)
    w3 = params["w3"].astype(jnp.float32)
    w4 = params["w4"].astype(jnp.float32)
    h = jnp.maximum(x @ w1 + params["b1"], 0.0)
    h = h @ w2 + params["b2"]
    h = jnp.maximum(h @ w3 + params["b3"], 0.0)
    return h @ w4 + params["b4"]


if __name__ == "__main__":
    key = jax.random.PRNGKey(0)
    key, kx1, kx2 = jax.random.split(key, 3)
    params = init_params(key)

    # Small batch (single grid step).
    B1 = 8
    x1 = jax.random.normal(kx1, (B1, D_IN), dtype=jnp.float32)
    y1 = jax.block_until_ready(tsnet_forward(x1, params))
    r1 = tsnet_reference(x1, params)
    assert y1.shape == (B1, D_IN), y1.shape
    assert jnp.allclose(y1, r1, atol=2e-2, rtol=2e-2), "mismatch vs reference (B=8)"

    # Non-multiple batch with a small tile to exercise the grid + padding path.
    B2 = 100
    x2 = jax.random.normal(kx2, (B2, D_IN), dtype=jnp.float32)
    y2 = jax.block_until_ready(tsnet_forward(x2, params, block_b=32))
    r2 = tsnet_reference(x2, params)
    assert y2.shape == (B2, D_IN), y2.shape
    assert jnp.allclose(y2, r2, atol=2e-2, rtol=2e-2), "mismatch vs reference (B=100)"

    print("KERNEL_OK")
</pallas_src>

<mosaic_0001>
module attributes {stable_mosaic.version = 11 : i64} {
  func.func @tsnet_kernel(%arg0: i32, %arg1: memref<8x180xf32, #tpu.memory_space<vmem>>, %arg2: memref<180x128xbf16, #tpu.memory_space<vmem>>, %arg3: memref<1x128xf32, #tpu.memory_space<vmem>>, %arg4: memref<128x64xbf16, #tpu.memory_space<vmem>>, %arg5: memref<1x64xf32, #tpu.memory_space<vmem>>, %arg6: memref<64x128xbf16, #tpu.memory_space<vmem>>, %arg7: memref<1x128xf32, #tpu.memory_space<vmem>>, %arg8: memref<128x180xbf16, #tpu.memory_space<vmem>>, %arg9: memref<1x180xf32, #tpu.memory_space<vmem>>, %arg10: memref<8x180xf32, #tpu.memory_space<vmem>>) attributes {dimension_semantics = [#tpu.dimension_semantics<parallel>], iteration_bounds = array<i64: 1>, scalar_prefetch = 0 : i64, scratch_operands = 0 : i64, tpu.core_type = #tpu.core_type<tc>, window_params = [{transform_indices = @transform_0, window_bounds = array<i64: 8, 180>}, {pipeline_mode = #tpu.pipeline_mode<synchronous>, transform_indices = @transform_1, window_bounds = array<i64: 180, 128>}, {pipeline_mode = #tpu.pipeline_mode<synchronous>, transform_indices = @transform_2, window_bounds = array<i64: 1, 128>}, {pipeline_mode = #tpu.pipeline_mode<synchronous>, transform_indices = @transform_3, window_bounds = array<i64: 128, 64>}, {pipeline_mode = #tpu.pipeline_mode<synchronous>, transform_indices = @transform_4, window_bounds = array<i64: 1, 64>}, {pipeline_mode = #tpu.pipeline_mode<synchronous>, transform_indices = @transform_5, window_bounds = array<i64: 64, 128>}, {pipeline_mode = #tpu.pipeline_mode<synchronous>, transform_indices = @transform_6, window_bounds = array<i64: 1, 128>}, {pipeline_mode = #tpu.pipeline_mode<synchronous>, transform_indices = @transform_7, window_bounds = array<i64: 128, 180>}, {pipeline_mode = #tpu.pipeline_mode<synchronous>, transform_indices = @transform_8, window_bounds = array<i64: 1, 180>}, {transform_indices = @transform_9, window_bounds = array<i64: 8, 180>}]} {
    %c0 = arith.constant 0 : index
    %c0_0 = arith.constant 0 : index
    %0 = vector.load %arg1[%c0, %c0_0] : memref<8x180xf32, #tpu.memory_space<vmem>>, vector<8x180xf32>
    %1 = arith.truncf %0 : vector<8x180xf32> to vector<8x180xbf16>
    %c0_1 = arith.constant 0 : index
    %c0_2 = arith.constant 0 : index
    %2 = vector.load %arg2[%c0_1, %c0_2] : memref<180x128xbf16, #tpu.memory_space<vmem>>, vector<180x128xbf16>
    %cst = arith.constant dense<0.000000e+00> : vector<8x128xf32>
    %3 = tpu.matmul %1, %2, %cst {dimension_numbers = #tpu.dot_dimension_numbers<[1], [0], [0], [1], [0, 0, 1, 1], [], []>} : vector<8x180xbf16>, vector<180x128xbf16>, vector<8x128xf32> -> vector<8x128xf32>
    %c0_3 = arith.constant 0 : index
    %c0_4 = arith.constant 0 : index
    %4 = vector.load %arg3[%c0_3, %c0_4] : memref<1x128xf32, #tpu.memory_space<vmem>>, vector<1x128xf32>
    %5 = vector.broadcast %4 : vector<1x128xf32> to vector<8x128xf32>
    %6 = arith.addf %3, %5 : vector<8x128xf32>
    %cst_5 = arith.constant 0.000000e+00 : f32
    %7 = vector.broadcast %cst_5 : f32 to vector<8x128xf32>
    %8 = arith.maximumf %6, %7 : vector<8x128xf32>
    %9 = arith.truncf %8 : vector<8x128xf32> to vector<8x128xbf16>
    %c0_6 = arith.constant 0 : index
    %c0_7 = arith.constant 0 : index
    %10 = vector.load %arg4[%c0_6, %c0_7] : memref<128x64xbf16, #tpu.memory_space<vmem>>, vector<128x64xbf16>
    %cst_8 = arith.constant dense<0.000000e+00> : vector<8x64xf32>
    %11 = tpu.matmul %9, %10, %cst_8 {dimension_numbers = #tpu.dot_dimension_numbers<[1], [0], [0], [1], [0, 0, 1, 1], [], []>} : vector<8x128xbf16>, vector<128x64xbf16>, vector<8x64xf32> -> vector<8x64xf32>
    %c0_9 = arith.constant 0 : index
    %c0_10 = arith.constant 0 : index
    %12 = vector.load %arg5[%c0_9, %c0_10] : memref<1x64xf32, #tpu.memory_space<vmem>>, vector<1x64xf32>
    %13 = vector.broadcast %12 : vector<1x64xf32> to vector<8x64xf32>
    %14 = arith.addf %11, %13 : vector<8x64xf32>
    %15 = arith.truncf %14 : vector<8x64xf32> to vector<8x64xbf16>
    %c0_11 = arith.constant 0 : index
    %c0_12 = arith.constant 0 : index
    %16 = vector.load %arg6[%c0_11, %c0_12] : memref<64x128xbf16, #tpu.memory_space<vmem>>, vector<64x128xbf16>
    %cst_13 = arith.constant dense<0.000000e+00> : vector<8x128xf32>
    %17 = tpu.matmul %15, %16, %cst_13 {dimension_numbers = #tpu.dot_dimension_numbers<[1], [0], [0], [1], [0, 0, 1, 1], [], []>} : vector<8x64xbf16>, vector<64x128xbf16>, vector<8x128xf32> -> vector<8x128xf32>
    %c0_14 = arith.constant 0 : index
    %c0_15 = arith.constant 0 : index
    %18 = vector.load %arg7[%c0_14, %c0_15] : memref<1x128xf32, #tpu.memory_space<vmem>>, vector<1x128xf32>
    %19 = vector.broadcast %18 : vector<1x128xf32> to vector<8x128xf32>
    %20 = arith.addf %17, %19 : vector<8x128xf32>
    %cst_16 = arith.constant 0.000000e+00 : f32
    %21 = vector.broadcast %cst_16 : f32 to vector<8x128xf32>
    %22 = arith.maximumf %20, %21 : vector<8x128xf32>
    %23 = arith.truncf %22 : vector<8x128xf32> to vector<8x128xbf16>
    %c0_17 = arith.constant 0 : index
    %c0_18 = arith.constant 0 : index
    %24 = vector.load %arg8[%c0_17, %c0_18] : memref<128x180xbf16, #tpu.memory_space<vmem>>, vector<128x180xbf16>
    %cst_19 = arith.constant dense<0.000000e+00> : vector<8x180xf32>
    %25 = tpu.matmul %23, %24, %cst_19 {dimension_numbers = #tpu.dot_dimension_numbers<[1], [0], [0], [1], [0, 0, 1, 1], [], []>} : vector<8x128xbf16>, vector<128x180xbf16>, vector<8x180xf32> -> vector<8x180xf32>
    %c0_20 = arith.constant 0 : index
    %c0_21 = arith.constant 0 : index
    %26 = vector.load %arg9[%c0_20, %c0_21] : memref<1x180xf32, #tpu.memory_space<vmem>>, vector<1x180xf32>
    %27 = vector.broadcast %26 : vector<1x180xf32> to vector<8x180xf32>
    %28 = arith.addf %25, %27 : vector<8x180xf32>
    %c0_22 = arith.constant 0 : index
    %c0_23 = arith.constant 0 : index
    %29 = vector.load %arg10[%c0_22, %c0_23] : memref<8x180xf32, #tpu.memory_space<vmem>>, vector<8x180xf32>
    tpu.vector_store %arg10[%c0_22, %c0_23], %28 {strides = array<i32>} : memref<8x180xf32, #tpu.memory_space<vmem>>, vector<8x180xf32>,
    return
  }
  func.func @transform_0(%arg0: i32) -> (i32, i32) {
    %c0_i32 = arith.constant 0 : i32
    %c0_i32_0 = arith.constant 0 : i32
    return %arg0, %c0_i32 : i32, i32
  }
  func.func @transform_1(%arg0: i32) -> (i32, i32) {
    %c0_i32 = arith.constant 0 : i32
    %c0_i32_0 = arith.constant 0 : i32
    %c0_i32_1 = arith.constant 0 : i32
    return %c0_i32, %c0_i32_0 : i32, i32
  }
  func.func @transform_2(%arg0: i32) -> (i32, i32) {
    %c0_i32 = arith.constant 0 : i32
    %c0_i32_0 = arith.constant 0 : i32
    %c0_i32_1 = arith.constant 0 : i32
    return %c0_i32, %c0_i32_0 : i32, i32
  }
  func.func @transform_3(%arg0: i32) -> (i32, i32) {
    %c0_i32 = arith.constant 0 : i32
    %c0_i32_0 = arith.constant 0 : i32
    %c0_i32_1 = arith.constant 0 : i32
    return %c0_i32, %c0_i32_0 : i32, i32
  }
  func.func @transform_4(%arg0: i32) -> (i32, i32) {
    %c0_i32 = arith.constant 0 : i32
    %c0_i32_0 = arith.constant 0 : i32
    %c0_i32_1 = arith.constant 0 : i32
    return %c0_i32, %c0_i32_0 : i32, i32
  }
  func.func @transform_5(%arg0: i32) -> (i32, i32) {
    %c0_i32 = arith.constant 0 : i32
    %c0_i32_0 = arith.constant 0 : i32
    %c0_i32_1 = arith.constant 0 : i32
    return %c0_i32, %c0_i32_0 : i32, i32
  }
  func.func @transform_6(%arg0: i32) -> (i32, i32) {
    %c0_i32 = arith.constant 0 : i32
    %c0_i32_0 = arith.constant 0 : i32
    %c0_i32_1 = arith.constant 0 : i32
    return %c0_i32, %c0_i32_0 : i32, i32
  }
  func.func @transform_7(%arg0: i32) -> (i32, i32) {
    %c0_i32 = arith.constant 0 : i32
    %c0_i32_0 = arith.constant 0 : i32
    %c0_i32_1 = arith.constant 0 : i32
    return %c0_i32, %c0_i32_0 : i32, i32
  }
  func.func @transform_8(%arg0: i32) -> (i32, i32) {
    %c0_i32 = arith.constant 0 : i32
    %c0_i32_0 = arith.constant 0 : i32
    %c0_i32_1 = arith.constant 0 : i32
    return %c0_i32, %c0_i32_0 : i32, i32
  }
  func.func @transform_9(%arg0: i32) -> (i32, i32) {
    %c0_i32 = arith.constant 0 : i32
    %c0_i32_0 = arith.constant 0 : i32
    return %arg0, %c0_i32 : i32, i32
  }
}

</mosaic_0001>

<bundles_post_ra>
// kernel: tpu_custom_call.1
= control target key start
LH: loop header
LB: loop body
LE: loop exit
PB: predicated region body
PF: predicated region fallthrough
CT: control target
= control target key end

     0   :  { %vm138_vm0 = vcmask 1041408   ;;  %s922_s0 = inlined_call_operand.vmem [shape: f32[8,180], index: 0, kind: input, shape index: {}]   ;;  %s923_s1 = inlined_call_operand.vmem [shape: bf16[180,128], index: 1, kind: input, shape index: {}]   ;;  %s924_s2 = inlined_call_operand.vmem [shape: f32[1,128], index: 2, kind: input, shape index: {}]   ;;  %s925_s3 = inlined_call_operand.vmem [shape: bf16[128,64], index: 3, kind: input, shape index: {}]   ;;  %s926_s4 = inlined_call_operand.vmem [shape: f32[1,64], index: 4, kind: input, shape index: {}]   ;;  %s927_s5 = inlined_call_operand.vmem [shape: bf16[64,128], index: 5, kind: input, shape index: {}]   ;;  %s928_s6 = inlined_call_operand.vmem [shape: f32[1,128], index: 6, kind: input, shape index: {}]   ;;  %s929_s7 = inlined_call_operand.vmem [shape: bf16[128,180], index: 7, kind: input, shape index: {}]   ;;  %s930_s8 = inlined_call_operand.vmem [shape: f32[1,180], index: 8, kind: input, shape index: {}]   ;;  %s931_s9 = inlined_call_operand.hbm [shape: f32[8,180], index: 9, kind: output, shape index: {}]  }
   0x1   :  { %v618_v0 = vld [vmem:[%s923_s1 + $0x38] sm:$0xff]  ;;  %v617_v2 = vld [vmem:[%s923_s1 + $0x30] sm:$0xff]  ;;  %v616_v6 = vld [vmem:[%s923_s1 + $0x28] sm:$0xff] }
   0x2   :  { %v60_v1 = vld [vmem:[%s923_s1 + $0x58] sm:$0x3]  ;;  %142 = vmatpush.bf16.msra.mxu0 %v618_v0  ;;  %v628_v8 = vld [vmem:[%s925_s3 + $0x30] sm:$0xff] }
   0x3   :  { %v110_v3 = vunpack.c.l.b16 %v60_v1  ;;  %v629_v5 = vld [vmem:[%s925_s3 + $0x38] sm:$0xff]  ;;  %v621_v9 = vld [vmem:[%s923_s1 + $0x50] sm:$0xff] }
   0x4   :  { %238 = vmatpush.bf16.msra.mxu2 %v629_v5 }
   0x5   :  { %v122_v4 = vpack.c.b16 %v110_v3, %v110_v3 }
   0x6   :  { %143 = vmatpush.bf16.msra.mxu0 %v617_v2 }
   0x7   :  { %v140_v7 = vsel %vm138_vm0, %v122_v4, 0 }
   0x8   :  { %159 = vmatpush.bf16.msra.mxu1 %v140_v7 }
   0x9   :  { %14 = vsyncpa [#allocation3], 0  ;;  %v615_v10 = vld [vmem:[%s923_s1 + $0x20] sm:$0xff]  ;;  %239 = vmatpush.bf16.msra.mxu2 %v628_v8  ;;  %v627_v11 = vld [vmem:[%s925_s3 + $0x28] sm:$0xff]  ;;  %vm134_vm1 = vcmask 424960   ;;  %vm288_vm2 = vcmask 523264  }
   0xa   :  { %144 = vmatpush.bf16.msra.mxu0 %v616_v6  ;;  %v620_v12 = vld [vmem:[%s923_s1 + $0x48] sm:$0xff]  ;;  %v614_v13 = vld [vmem:[%s923_s1 + $0x18] sm:$0xff]  ;;  %v626_v14 = vld [vmem:[%s925_s3 + $0x20] sm:$0xff]  ;;  %s444_s12 = sshll.u32 %s931_s9, 4  ;;  %s445_s12 = int_to_ptr.hbm [resolvable:$true] %s444_s12 }
   0xb   :  { %v619_v15 = vld [vmem:[%s923_s1 + $0x40] sm:$0xff]  ;;  %v35_v16 = vld [vmem:[%s922_s0 + $0x8] sm:$0xff]  ;;  %v613_v17 = vld [vmem:[%s923_s1 + $0x10] sm:$0xff] }
   0xc   :  { %160 = vmatpush.bf16.msra.mxu1 %v621_v9  ;;  %v37_v18 = vpack.c.bf16 %v35_v16, %v35_v16  ;;  %v612_v19 = vld [vmem:[%s923_s1 + $0x8] sm:$0xff]  ;;  %v611_v20 = vld [vmem:[%s923_s1] sm:$0xff]  ;;  %v625_v23 = vld [vmem:[%s925_s3 + $0x18] sm:$0xff] }
   0xd   :  { %240 = vmatpush.bf16.msra.mxu2 %v627_v11  ;;  %v34_v21 = vld [vmem:[%s922_s0] sm:$0xff]  ;;  %v624_v24 = vld [vmem:[%s925_s3 + $0x10] sm:$0xff]  ;;  %v623_v25 = vld [vmem:[%s925_s3 + $0x8] sm:$0xff] }
   0xe   :  { %145 = vmatpush.bf16.msra.mxu0 %v615_v10  ;;  %v36_v22 = vpack.c.bf16 %v34_v21, %v34_v21  ;;  %v622_v26 = vld [vmem:[%s925_s3] sm:$0xff]  ;;  %v633_v27 = vld [vmem:[%s927_s5 + $0x18] sm:$0xff]  ;;  %v632_v28 = vld [vmem:[%s927_s5 + $0x10] sm:$0xff] }
   0xf   :  { %296 = vmatpush.bf16.msra.mxu3 %v633_v27  ;;  %v631_v29 = vld [vmem:[%s927_s5 + $0x8] sm:$0xff]  ;;  %v651_v31 = vld [vmem:[%s924_s2] ss:$0 sm:$0xff]  ;;  %v605_v40 = vld [vmem:[%s929_s7 + $0x70] sm:$0xf] }
  0x10   :  { %161 = vmatpush.bf16.msra.mxu1 %v620_v12  ;;  %v630_v39 = vld [vmem:[%s927_s5] sm:$0xff]  ;;  %v649_v41 = vld [vmem:[%s929_s7 + $0x74] sm:$0xf0]  ;;  %v648_v42 = vld [vmem:[%s929_s7 + $0x74] sm:$0xf] }
  0x11   :  { %241 = vmatpush.bf16.msra.mxu2 %v626_v14  ;;  %v606_v43 = vor.u32 %v649_v41, %v605_v40  ;;  %v607_v44 = vld [vmem:[%s929_s7 + $0x78] sm:$0xf0]  ;;  %v597_v45 = vld [vmem:[%s929_s7 + $0x60] sm:$0xf]  ;;  %v647_v46 = vld [vmem:[%s929_s7 + $0x64] sm:$0xf0] }
  0x12   :  { %146 = vmatpush.bf16.msra.mxu0 %v614_v13  ;;  %v610_v47 = vor.u32 %v648_v42, %v607_v44  ;;  %v646_v48 = vld [vmem:[%s929_s7 + $0x64] sm:$0xf]  ;;  %v599_v49 = vld [vmem:[%s929_s7 + $0x68] sm:$0xf0]  ;;  %v598_v50 = vor.u32 %v647_v46, %v597_v45  ;;  %v589_v52 = vld [vmem:[%s929_s7 + $0x50] sm:$0xf] }
  0x13   :  { %297 = vmatpush.bf16.msra.mxu3 %v632_v28  ;;  %v602_v51 = vor.u32 %v646_v48, %v599_v49  ;;  %v645_v53 = vld [vmem:[%s929_s7 + $0x54] sm:$0xf0]  ;;  %v644_v54 = vld [vmem:[%s929_s7 + $0x54] sm:$0xf]  ;;  %v591_v55 = vld [vmem:[%s929_s7 + $0x58] sm:$0xf0] }
  0x14   :  { %162 = vmatpush.bf16.msra.mxu1 %v619_v15  ;;  %v590_v56 = vor.u32 %v645_v53, %v589_v52  ;;  %v594_v57 = vor.u32 %v644_v54, %v591_v55  ;;  %v581_v58 = vld [vmem:[%s929_s7 + $0x40] sm:$0xf]  ;;  %v643_v59 = vld [vmem:[%s929_s7 + $0x44] sm:$0xf0]  ;;  %v642_v60 = vld [vmem:[%s929_s7 + $0x44] sm:$0xf] }
  0x15   :  { %242 = vmatpush.bf16.msra.mxu2 %v625_v23  ;;  %v583_v61 = vld [vmem:[%s929_s7 + $0x48] sm:$0xf0]  ;;  %v582_v62 = vor.u32 %v643_v59, %v581_v58  ;;  %v573_v0 = vld [vmem:[%s929_s7 + $0x30] sm:$0xf]  ;;  %v641_v1 = vld [vmem:[%s929_s7 + $0x34] sm:$0xf0] }
  0x16   :  { %147 = vmatpush.bf16.msra.mxu0 %v613_v17  ;;  %v586_v63 = vor.u32 %v642_v60, %v583_v61  ;;  %v640_v2 = vld [vmem:[%s929_s7 + $0x34] sm:$0xf]  ;;  %v575_v3 = vld [vmem:[%s929_s7 + $0x38] sm:$0xf0]  ;;  %v574_v4 = vor.u32 %v641_v1, %v573_v0  ;;  %v565_v6 = vld [vmem:[%s929_s7 + $0x20] sm:$0xf] }
  0x17   :  { %497 = vmatmul.msk.bf16.vlgmr.msra.gmra.mxu1 %vm134_vm1, %v37_v18  ;;  %298 = vmatpush.bf16.msra.mxu3 %v631_v29  ;;  %v578_v5 = vor.u32 %v640_v2, %v575_v3  ;;  %v639_v7 = vld [vmem:[%s929_s7 + $0x24] sm:$0xf0]  ;;  %v638_v8 = vld [vmem:[%s929_s7 + $0x24] sm:$0xf]  ;;  %v567_v9 = vld [vmem:[%s929_s7 + $0x28] sm:$0xf0] }
  0x18   :  { %409 = vmatpush.bf16.msrb.mxu1 %v606_v43  ;;  %v566_v10 = vor.u32 %v639_v7, %v565_v6  ;;  %v570_v11 = vor.u32 %v638_v8, %v567_v9  ;;  %v652_v12 = vld [vmem:[%s926_s4] ss:$0 sm:$0xff]  ;;  %v557_v17 = vld [vmem:[%s929_s7 + $0x10] sm:$0xf]  ;;  %v637_v18 = vld [vmem:[%s929_s7 + $0x14] sm:$0xf0] }
  0x19   :  { %243 = vmatpush.bf16.msra.mxu2 %v624_v24  ;;  %v559_v21 = vld [vmem:[%s929_s7 + $0x18] sm:$0xf0]  ;;  %v549_v23 = vld [vmem:[%s929_s7] sm:$0xf]  ;;  %v635_v24 = vld [vmem:[%s929_s7 + $0x4] sm:$0xf0] }
  0x1a   :  { %148 = vmatpush.bf16.msra.mxu0 %v612_v19  ;;  %v636_v19 = vld [vmem:[%s929_s7 + $0x14] sm:$0xf]  ;;  %v551_v27 = vld [vmem:[%s929_s7 + $0x8] sm:$0xf0]  ;;  %v653_v29 = vld [vmem:[%s928_s6] ss:$0 sm:$0xff] }
  0x1b   :  { %299 = vmatpush.bf16.msra.mxu3 %v630_v39 }
  0x1c   :  { %410 = vmatpush.bf16.msrb.mxu1 %v598_v50 }
  0x1d   :  { %244 = vmatpush.bf16.msra.mxu2 %v623_v25  ;;  %v634_v25 = vld [vmem:[%s929_s7 + $0x4] sm:$0xf]  ;;  %s680_s7 = smov [#allocation2]  }
  0x1e   :  { %149 = vmatpush.bf16.msra.mxu0 %v611_v20  ;;  %v558_v20 = vor.u32 %v637_v18, %v557_v17  ;;  %v554_v28 = vor.u32 %v634_v25, %v551_v27  ;;  %s442_s10 = sshll.u32 %s680_s7, 4  ;;  %s443_s10 = int_to_ptr.vmem [resolvable:$true] %s442_s10 }
  0x1f   :  { %422 = vmatpush.bf16.msrb.mxu3 %v610_v47 }
  0x20   :  { %411 = vmatpush.bf16.msrb.mxu1 %v590_v56 }
  0x21   :  { %150 = vmatmul.bf16.vlgmr.msra.gmra.mxu0 %v36_v22  ;;  %245 = vmatpush.bf16.msra.mxu2 %v622_v26  ;;  %v562_v22 = vor.u32 %v636_v19, %v559_v21  ;;  %v550_v26 = vor.u32 %v635_v24, %v549_v23 }
  0x23   :  { %423 = vmatpush.bf16.msrb.mxu3 %v602_v51 }
  0x24   :  { %412 = vmatpush.bf16.msrb.mxu1 %v582_v62 }
  0x27   :  { %424 = vmatpush.bf16.msrb.mxu3 %v594_v57 }
  0x28   :  { %413 = vmatpush.bf16.msrb.mxu1 %v574_v4 }
  0x2b   :  { %425 = vmatpush.bf16.msrb.mxu3 %v586_v63 }
  0x2c   :  { %414 = vmatpush.bf16.msrb.mxu1 %v566_v10 }
  0x2f   :  { %426 = vmatpush.bf16.msrb.mxu3 %v578_v5 }
  0x30   :  { %415 = vmatpush.bf16.msrb.mxu1 %v558_v20 }
  0x33   :  { %427 = vmatpush.bf16.msrb.mxu3 %v570_v11 }
  0x34   :  { %416 = vmatpush.bf16.msrb.mxu1 %v550_v26 }
  0x37   :  { %428 = vmatpush.bf16.msrb.mxu3 %v562_v22 }
  0x3b   :  { %429 = vmatpush.bf16.msrb.mxu3 %v554_v28 }
  0x94   :  { %v164_v30 = vpop.f32.mrf.mxu1 }
  0x9c   :  { %v166_v32 = vpop.f32.mrf.mxu1 }
  0x9e   :  { %v151_v33 = vpop.f32.mrf.mxu0 }
  0x9f   :  { %v152_v34 = vadd.f32 %v651_v31, %v151_v33 }
  0xa1   :  { %v165_v35 = vadd.f32 %v164_v30, %v152_v34 }
  0xa3   :  { %v168_v36 = vmax.f32 %v165_v35, 0.0  ;;  %v323_v35 = vld [vmem:[%s930_s8] sm:$0x3] }
  0xa4   :  { %v326_v39 = vperm.slane %v323_v35, 1 }
  0xa5   :  { %v169_v37 = vpack.c.bf16 %v168_v36, %v168_v36  ;;  %v325_v36 = vperm.slane %v323_v35, 0 }
  0xa6   :  { %v153_v38 = vpop.f32.mrf.mxu0 }
  0xa7   :  { %246 = vmatmul.bf16.vlgmr.msra.gmra.mxu2 %v169_v37 }
 0x12a   :  { %v247_v13 = vpop.f32.mrf.mxu2 }
 0x12b   :  { %v248_v14 = vadd.f32 %v652_v12, %v247_v13 }
 0x12d   :  { %v251_v15 = vpack.c.bf16 %v248_v14, %v248_v14 }
 0x12f   :  { %546 = vmatmul.msk.bf16.vlgmr.msra.gmra.mxu3 %vm288_vm2, %v251_v15 }
 0x132   :  { %v249_v16 = vpop.f32.mrf.mxu2 }
 0x1b2   :  { %v301_v30 = vpop.f32.mrf.mxu3 }
 0x1b3   :  { %v302_v31 = vadd.f32 %v653_v29, %v301_v30 }
 0x1b5   :  { %v305_v32 = vmax.f32 %v302_v31, 0.0 }
 0x1b7   :  { %v306_v33 = vpack.c.bf16 %v305_v32, %v305_v32 }
 0x1b9   :  { %417 = vmatmul.bf16.vlgmr.msrb.gmra.mxu1 %v306_v33  ;;  %430 = vmatmul.bf16.vlgmr.msrb.gmra.mxu3 %v306_v33 }
 0x1ba   :  { %v303_v34 = vpop.f32.mrf.mxu3 }
 0x236   :  { %v418_v37 = vpop.f32.mrf.mxu1 }
 0x237   :  { %v419_v38 = vadd.f32 %v418_v37, %v325_v36 }
 0x239   :  { %435 = vst [vmem:[#allocation2] sm:$0xff] %v419_v38 }
 0x23c   :  { %v431_v40 = vpop.f32.mrf.mxu3 }
 0x23d   :  { %v432_v41 = vadd.f32 %v431_v40, %v326_v39 }
 0x23e   :  { %v420_v42 = vpop.f32.mrf.mxu1 }
 0x23f   :  { %436 = vst.msk [vmem:[#allocation2 + $0x8] sm:$0xff] %vm134_vm1, %v432_v41 }
 0x240   :  { %447 = dma.vmem_to_hbm [thread:$0]  %s443_s10, 256, %s445_s12, [#allocation3]  }
 0x244   :  { %v433_v43 = vpop.f32.mrf.mxu3 }
 0x245   :  { %678 = dma.done.wait [#allocation3], 256  }
 0x246   :  { %679 = vsyncadd [#allocation3], 4294967040 }
 0x247   :  { %452 = vsyncpa [#allocation3], 1 }

</bundles_post_ra>
